<compile_context>
chip_gen: v6e
topology: v6e:2x2x1
jax: 0.10.0
libtpu: 0.0.40
codegen_flags: <defaults>
</compile_context>

<pallas_src>
import functools

import jax
import jax.numpy as jnp
from jax.experimental import pallas as pl
from jax.experimental.pallas import tpu as pltpu

LANE = 128       # padded lane width for hidden / output layers
HIDDEN = 64      # logical hidden width of the PyTorch module
TB_CAP = 1024    # max batch-tile rows per grid step

# Row offsets inside the packed parameter slab (sublane-aligned blocks).
_W1_OFF = 0                  # rows [  0, 128) : W1 (in_size x 64, zero-padded)
_W2_OFF = LANE               # rows [128, 256) : W2 (64 x 64, zero-padded)
_W3_OFF = 2 * LANE           # rows [256, 384) : W3 (64 x n_actions, zero-padded)
_B_OFF = 3 * LANE            # rows [384, 392) : b1 / b2 / b3 in rows 0 / 1 / 2
PARAM_ROWS = 3 * LANE + 8    # 392 rows x 128 lanes


def _dqn_kernel(x_ref, p_ref, o_ref, *, in_size):
    """Fused 3-layer MLP: (Linear + ReLU) x2 -> Linear, lane-dense (128).

    Weights live in a single resident (392, 128) slab; matmuls run in the slab
    dtype (bf16 by default) with f32 accumulation; bias add / ReLU stay f32.
    """
    f32 = jnp.float32
    wdt = p_ref.dtype
    cast = (lambda a: a) if wdt == f32 else (lambda a: a.astype(wdt))

    x = x_ref[...]                                      # (TB, in_size)
    w2 = p_ref[_W2_OFF:_W2_OFF + LANE, :]               # (128, 128)
    w3 = p_ref[_W3_OFF:_W3_OFF + LANE, :]               # (128, 128)
    bias = p_ref[_B_OFF:_B_OFF + 8, :].astype(f32)      # (8, 128), one load
    b1 = bias[0:1, :]
    b2 = bias[1:2, :]
    b3 = bias[2:3, :]

    if in_size % 8 == 0:
        # Sublane-aligned feature count: single MXU pass with K = in_size.
        w1 = p_ref[_W1_OFF:_W1_OFF + in_size, :]
        h1 = jnp.dot(cast(x), w1, preferred_element_type=f32)
    else:
        # Tiny / unaligned feature count (e.g. Flappy Bird's 4-float state):
        # unrolled VPU multiply-accumulate avoids a sub-tile MXU contraction
        # and removes any need for a padded-x HBM slab.
        w1 = p_ref[_W1_OFF:_W1_OFF + in_size, :].astype(f32)   # (in_size, 128)
        xf = x.astype(f32)
        h1 = xf[:, 0:1] * w1[0:1, :]
        for k in range(1, in_size):
            h1 = h1 + xf[:, k:k + 1] * w1[k:k + 1, :]

    h1 = jnp.maximum(h1 + b1, 0.0)                       # f32 bias/ReLU
    h2 = jnp.dot(cast(h1), w2, preferred_element_type=f32) + b2
    h2 = jnp.maximum(h2, 0.0)
    out = jnp.dot(cast(h2), w3, preferred_element_type=f32) + b3
    o_ref[...] = out.astype(o_ref.dtype)                 # lane-dense store


def pack_params(w1, b1, w2, b2, w3, b3, dtype=jnp.bfloat16):
    """Pack (in, out)-layout weights + biases into one zero-padded (392, 128)
    slab: a single HBM->VMEM DMA per kernel call, resident across batch tiles.
    bf16 storage (default) halves the param DMA and gives MXU-native operands;
    pass dtype=jnp.float32 for bit-exact parity with the f32 reference."""
    in_size, hidden = w1.shape
    n_actions = w3.shape[1]
    assert in_size <= LANE, f"input_size must be <= {LANE}, got {in_size}"
    assert hidden == HIDDEN, f"hidden width must be {HIDDEN}, got {hidden}"
    assert w2.shape == (HIDDEN, HIDDEN), f"bad w2 shape {w2.shape}"
    assert w3.shape[0] == HIDDEN, f"bad w3 shape {w3.shape}"
    assert n_actions <= LANE, f"n_actions must be <= {LANE}, got {n_actions}"

    slab = jnp.zeros((PARAM_ROWS, LANE), jnp.float32)
    slab = slab.at[_W1_OFF:_W1_OFF + in_size, :HIDDEN].set(w1)
    slab = slab.at[_W2_OFF:_W2_OFF + HIDDEN, :HIDDEN].set(w2)
    slab = slab.at[_W3_OFF:_W3_OFF + HIDDEN, :n_actions].set(w3)
    slab = slab.at[_B_OFF + 0, :HIDDEN].set(b1.reshape(-1))
    slab = slab.at[_B_OFF + 1, :HIDDEN].set(b2.reshape(-1))
    slab = slab.at[_B_OFF + 2, :n_actions].set(b3.reshape(-1))
    return slab.astype(dtype)


def _round_up(a, m):
    return (a + m - 1) // m * m


@functools.partial(jax.jit, static_argnames=("n_actions",))
def dqn_forward(x, param_slab, *, n_actions):
    B, in_size = x.shape

    # Batch tiling: big tiles amortize the ~0.35us per-grid-step overhead, but
    #  (a) never pad more than ~one 8-row sublane group per tile, and
    #  (b) keep >= 2 grid steps once the batch reaches TB_CAP so the
    #      "parallel" axis can split across v7x's two TensorCores.
    num_tiles = pl.cdiv(B, TB_CAP)
    if B >= TB_CAP:
        num_tiles = max(num_tiles, 2)
    TB = _round_up(pl.cdiv(B, num_tiles), 8)
    grid = (num_tiles,)

    out_dtype = param_slab.dtype            # bf16 by default: halves writeback
    flops = 2 * B * LANE * (in_size + 2 * LANE)
    bytes_accessed = (x.size * x.dtype.itemsize
                      + param_slab.size * param_slab.dtype.itemsize
                      + B * LANE * jnp.dtype(out_dtype).itemsize)

    out_p = pl.pallas_call(
        functools.partial(_dqn_kernel, in_size=in_size),
        out_shape=jax.ShapeDtypeStruct((B, LANE), out_dtype),
        grid=grid,
        in_specs=[
            pl.BlockSpec((TB, in_size), lambda i: (i, 0)),        # activations stream
            pl.BlockSpec((PARAM_ROWS, LANE), lambda i: (0, 0)),   # params resident
        ],
        out_specs=pl.BlockSpec((TB, LANE), lambda i: (i, 0)),     # lane-dense store
        compiler_params=pltpu.CompilerParams(
            dimension_semantics=("parallel",)),
        cost_estimate=pl.CostEstimate(
            flops=flops, transcendentals=0, bytes_accessed=bytes_accessed),
    )(x, param_slab)

    # Tiny (B, n_actions) slice; Q-values returned in f32 like the PyTorch module.
    return out_p[:B, :n_actions].astype(jnp.float32)


def init_dqn_params(key, input_size, n_actions, hidden=HIDDEN):
    """PyTorch nn.Linear default init: U(-1/sqrt(fan_in), 1/sqrt(fan_in)).
    Weights stored transposed, i.e. (in_features, out_features)."""
    def linear(key, fan_in, fan_out):
        kw, kb = jax.random.split(key)
        bound = 1.0 / jnp.sqrt(jnp.float32(fan_in))
        w = jax.random.uniform(kw, (fan_in, fan_out), jnp.float32, -bound, bound)
        b = jax.random.uniform(kb, (fan_out,), jnp.float32, -bound, bound)
        return w, b

    k1, k2, k3 = jax.random.split(key, 3)
    w1, b1 = linear(k1, input_size, hidden)
    w2, b2 = linear(k2, hidden, hidden)
    w3, b3 = linear(k3, hidden, n_actions)
    return w1, b1, w2, b2, w3, b3


def dqn_reference(x, w1, b1, w2, b2, w3, b3):
    """Pure-JAX reference of the same forward pass (correctness check)."""
    h1 = jnp.maximum(x @ w1 + b1, 0.0)
    h2 = jnp.maximum(h1 @ w2 + b2, 0.0)
    return h2 @ w3 + b3


if __name__ == "__main__":
    # Flappy-Bird DQN: small state vector, 2 actions (flap / no-flap).
    batch = 8
    input_size = 4
    n_actions = 2

    key = jax.random.PRNGKey(0)
    kx, kp = jax.random.split(key)
    x = jax.random.normal(kx, (batch, input_size), dtype=jnp.float32)
    params = init_dqn_params(kp, input_size, n_actions)
    ref = dqn_reference(x, *params)

    # Default path: bf16 param slab + bf16 MXU operands (f32 accumulation).
    slab_bf16 = pack_params(*params)                      # bf16
    out = jax.block_until_ready(dqn_forward(x, slab_bf16, n_actions=n_actions))
    assert out.shape == (batch, n_actions)
    assert jnp.allclose(out, ref, atol=5e-2, rtol=5e-2), "mismatch vs reference (bf16)"

    # f32 slab path: exact parity with the PyTorch/JAX reference.
    slab_f32 = pack_params(*params, dtype=jnp.float32)
    out_f32 = jax.block_until_ready(dqn_forward(x, slab_f32, n_actions=n_actions))
    assert out_f32.shape == (batch, n_actions)
    assert jnp.allclose(out_f32, ref, atol=1e-5, rtol=1e-5), "mismatch vs reference (f32)"

    print("KERNEL_OK")
</pallas_src>

<mosaic_0001>
module attributes {stable_mosaic.version = 11 : i64} {
  func.func @_dqn_kernel(%arg0: i32, %arg1: memref<8x4xf32, #tpu.memory_space<vmem>>, %arg2: memref<392x128xbf16, #tpu.memory_space<vmem>>, %arg3: memref<8x128xbf16, #tpu.memory_space<vmem>>) attributes {dimension_semantics = [#tpu.dimension_semantics<parallel>], iteration_bounds = array<i64: 1>, scalar_prefetch = 0 : i64, scratch_operands = 0 : i64, tpu.core_type = #tpu.core_type<tc>, window_params = [{transform_indices = @transform_0, window_bounds = array<i64: 8, 4>}, {pipeline_mode = #tpu.pipeline_mode<synchronous>, transform_indices = @transform_1, window_bounds = array<i64: 392, 128>}, {transform_indices = @transform_2, window_bounds = array<i64: 8, 128>}]} {
    %c0 = arith.constant 0 : index
    %c0_0 = arith.constant 0 : index
    %0 = vector.load %arg1[%c0, %c0_0] : memref<8x4xf32, #tpu.memory_space<vmem>>, vector<8x4xf32>
    %c128 = arith.constant 128 : index
    %c0_1 = arith.constant 0 : index
    %1 = vector.load %arg2[%c128, %c0_1] : memref<392x128xbf16, #tpu.memory_space<vmem>>, vector<128x128xbf16>
    %c256 = arith.constant 256 : index
    %c0_2 = arith.constant 0 : index
    %2 = vector.load %arg2[%c256, %c0_2] : memref<392x128xbf16, #tpu.memory_space<vmem>>, vector<128x128xbf16>
    %c384 = arith.constant 384 : index
    %c0_3 = arith.constant 0 : index
    %3 = vector.load %arg2[%c384, %c0_3] : memref<392x128xbf16, #tpu.memory_space<vmem>>, vector<8x128xbf16>
    %4 = arith.extf %3 : vector<8x128xbf16> to vector<8x128xf32>
    %5 = vector.extract_strided_slice %4 {offsets = [0, 0], sizes = [1, 128], strides = [1, 1]} : vector<8x128xf32> to vector<1x128xf32>
    %6 = vector.extract_strided_slice %4 {offsets = [1, 0], sizes = [1, 128], strides = [1, 1]} : vector<8x128xf32> to vector<1x128xf32>
    %7 = vector.extract_strided_slice %4 {offsets = [2, 0], sizes = [1, 128], strides = [1, 1]} : vector<8x128xf32> to vector<1x128xf32>
    %c0_4 = arith.constant 0 : index
    %c0_5 = arith.constant 0 : index
    %8 = vector.load %arg2[%c0_4, %c0_5] : memref<392x128xbf16, #tpu.memory_space<vmem>>, vector<4x128xbf16>
    %9 = arith.extf %8 : vector<4x128xbf16> to vector<4x128xf32>
    %10 = vector.extract_strided_slice %0 {offsets = [0, 0], sizes = [8, 1], strides = [1, 1]} : vector<8x4xf32> to vector<8x1xf32>
    %11 = vector.extract_strided_slice %9 {offsets = [0, 0], sizes = [1, 128], strides = [1, 1]} : vector<4x128xf32> to vector<1x128xf32>
    %12 = vector.broadcast %10 : vector<8x1xf32> to vector<8x128xf32>
    %13 = vector.broadcast %11 : vector<1x128xf32> to vector<8x128xf32>
    %14 = arith.mulf %12, %13 : vector<8x128xf32>
    %15 = vector.extract_strided_slice %0 {offsets = [0, 1], sizes = [8, 1], strides = [1, 1]} : vector<8x4xf32> to vector<8x1xf32>
    %16 = vector.extract_strided_slice %9 {offsets = [1, 0], sizes = [1, 128], strides = [1, 1]} : vector<4x128xf32> to vector<1x128xf32>
    %17 = vector.broadcast %15 : vector<8x1xf32> to vector<8x128xf32>
    %18 = vector.broadcast %16 : vector<1x128xf32> to vector<8x128xf32>
    %19 = arith.mulf %17, %18 : vector<8x128xf32>
    %20 = arith.addf %14, %19 : vector<8x128xf32>
    %21 = vector.extract_strided_slice %0 {offsets = [0, 2], sizes = [8, 1], strides = [1, 1]} : vector<8x4xf32> to vector<8x1xf32>
    %22 = vector.extract_strided_slice %9 {offsets = [2, 0], sizes = [1, 128], strides = [1, 1]} : vector<4x128xf32> to vector<1x128xf32>
    %23 = vector.broadcast %21 : vector<8x1xf32> to vector<8x128xf32>
    %24 = vector.broadcast %22 : vector<1x128xf32> to vector<8x128xf32>
    %25 = arith.mulf %23, %24 : vector<8x128xf32>
    %26 = arith.addf %20, %25 : vector<8x128xf32>
    %27 = vector.extract_strided_slice %0 {offsets = [0, 3], sizes = [8, 1], strides = [1, 1]} : vector<8x4xf32> to vector<8x1xf32>
    %28 = vector.extract_strided_slice %9 {offsets = [3, 0], sizes = [1, 128], strides = [1, 1]} : vector<4x128xf32> to vector<1x128xf32>
    %29 = vector.broadcast %27 : vector<8x1xf32> to vector<8x128xf32>
    %30 = vector.broadcast %28 : vector<1x128xf32> to vector<8x128xf32>
    %31 = arith.mulf %29, %30 : vector<8x128xf32>
    %32 = arith.addf %26, %31 : vector<8x128xf32>
    %33 = vector.broadcast %5 : vector<1x128xf32> to vector<8x128xf32>
    %34 = arith.addf %32, %33 : vector<8x128xf32>
    %cst = arith.constant 0.000000e+00 : f32
    %35 = vector.broadcast %cst : f32 to vector<8x128xf32>
    %36 = arith.maximumf %34, %35 : vector<8x128xf32>
    %37 = arith.truncf %36 : vector<8x128xf32> to vector<8x128xbf16>
    %cst_6 = arith.constant dense<0.000000e+00> : vector<8x128xf32>
    %38 = tpu.matmul %37, %1, %cst_6 {dimension_numbers = #tpu.dot_dimension_numbers<[1], [0], [0], [1], [0, 0, 1, 1], [], []>} : vector<8x128xbf16>, vector<128x128xbf16>, vector<8x128xf32> -> vector<8x128xf32>
    %39 = vector.broadcast %6 : vector<1x128xf32> to vector<8x128xf32>
    %40 = arith.addf %38, %39 : vector<8x128xf32>
    %cst_7 = arith.constant 0.000000e+00 : f32
    %41 = vector.broadcast %cst_7 : f32 to vector<8x128xf32>
    %42 = arith.maximumf %40, %41 : vector<8x128xf32>
    %43 = arith.truncf %42 : vector<8x128xf32> to vector<8x128xbf16>
    %cst_8 = arith.constant dense<0.000000e+00> : vector<8x128xf32>
    %44 = tpu.matmul %43, %2, %cst_8 {dimension_numbers = #tpu.dot_dimension_numbers<[1], [0], [0], [1], [0, 0, 1, 1], [], []>} : vector<8x128xbf16>, vector<128x128xbf16>, vector<8x128xf32> -> vector<8x128xf32>
    %45 = vector.broadcast %7 : vector<1x128xf32> to vector<8x128xf32>
    %46 = arith.addf %44, %45 : vector<8x128xf32>
    %47 = arith.truncf %46 : vector<8x128xf32> to vector<8x128xbf16>
    %c0_9 = arith.constant 0 : index
    %c0_10 = arith.constant 0 : index
    %48 = vector.load %arg3[%c0_9, %c0_10] : memref<8x128xbf16, #tpu.memory_space<vmem>>, vector<8x128xbf16>
    tpu.vector_store %arg3[%c0_9, %c0_10], %47 {strides = array<i32>} : memref<8x128xbf16, #tpu.memory_space<vmem>>, vector<8x128xbf16>,
    return
  }
  func.func @transform_0(%arg0: i32) -> (i32, i32) {
    %c0_i32 = arith.constant 0 : i32
    %c0_i32_0 = arith.constant 0 : i32
    return %arg0, %c0_i32 : i32, i32
  }
  func.func @transform_1(%arg0: i32) -> (i32, i32) {
    %c0_i32 = arith.constant 0 : i32
    %c0_i32_0 = arith.constant 0 : i32
    %c0_i32_1 = arith.constant 0 : i32
    return %c0_i32, %c0_i32_0 : i32, i32
  }
  func.func @transform_2(%arg0: i32) -> (i32, i32) {
    %c0_i32 = arith.constant 0 : i32
    %c0_i32_0 = arith.constant 0 : i32
    return %arg0, %c0_i32 : i32, i32
  }
}

</mosaic_0001>

<bundles_post_ra>
// kernel: dqn_forward.1
= control target key start
LH: loop header
LB: loop body
LE: loop exit
PB: predicated region body
PF: predicated region fallthrough
CT: control target
= control target key end

     0   :  { %7 = vsyncpa [#allocation3], 0  ;;  %s429_s9 = smov [#allocation2]   ;;  %s480_s0 = inlined_call_operand.vmem [shape: f32[8,4], index: 0, kind: input, shape index: {}]   ;;  %s481_s1 = inlined_call_operand.hbm [shape: bf16[392,128], index: 1, kind: input, shape index: {}]   ;;  %s482_s2 = inlined_call_operand.vmem [shape: bf16[8,128], index: 2, kind: output, shape index: {}]  }
   0x1   :  { %s15_s10 = sshll.u32 %s429_s9, 4  ;;  %s16_s10 = int_to_ptr.vmem [resolvable:$true] %s15_s10 }
   0x2   :  { %s415_s11 = scalar_lea.vmem %s16_s10, 3136  ;;  %p420_p1 = scmp.lt.s32.totalorder %s16_s10, %s16_s10 }
   0x3   :  { %p416_p0 = scmp.ne.s32.totalorder %s16_s10, %s415_s11  ;;  %p421_p2 = scmp.lt.s32.totalorder %s415_s11, %s415_s11 }
   0x5   :  { %p422_p3 = por %p421_p2, %p420_p1 }
   0x7   :  { %p423_p4 = pnand %p422_p3, %p416_p0 }
   0x9   :  { %426 = shalt.err (!%p423_p4)
}
   0xa   :  { %s430_s12 = smov 64   ;;  %s431_s13 = smov 4  }
   0xb   :  { %21 = dma.hbm_to_vmem [thread:$0]  %s481_s1, 3136, %s16_s10, [#allocation3], %s430_s12, %s430_s12, %s431_s13  }
   0xc   :  { %427 = dma.done.wait [#allocation3], 3136  }
   0xd   :  { %428 = vsyncadd [#allocation3], 4294964160  ;;  %v432_v0 = vmov 0   ;;  %v433_v1 = vmov 2   ;;  %v434_v2 = vmov 0.0   ;;  %v26_v3 = vld [vmem:[%s480_s0] sm:$0xff]  ;;  %v68_v20 = vlaneseq }
   0xe   :  { %386 = vset.pattern.permute.xlu0 %v432_v0  ;;  %388 = vset.pattern.permute.xlu1 %v433_v1  ;;  %v391_v4 = vld [vmem:[#allocation2 + $0x78] sm:$0xff]   ;;  %v392_v5 = vld [vmem:[#allocation2 + $0x70] sm:$0xff]   ;;  %v435_v6 = vmov 1   ;;  %v436_v7 = vmov 3   ;;  %v393_v8 = vld [vmem:[#allocation2 + $0x68] sm:$0xff]   ;;  %vm437_vm0 = vmmov 0  }
   0xf   :  { %337 = vmatprep.subr.bf16.mxu0 %v434_v2  ;;  %357 = vmatprep.subr.bf16.mxu1 %v434_v2  ;;  %v394_v9 = vld [vmem:[#allocation2 + $0x60] sm:$0xff]   ;;  %v395_v10 = vld [vmem:[#allocation2 + $0x58] sm:$0xff]   ;;  %v400_v12 = vld [vmem:[#allocation2 + $0xb0] sm:$0xff]   ;;  %v69_v21 = vshrl.u32 %v68_v20, 7 }
  0x10   :  { %65 = vperm.xlu0 %386, %v26_v3   ;;  %84 = vperm.xlu1 %388, %v26_v3   ;;  %v399_v11 = vld [vmem:[#allocation2 + $0xb8] sm:$0xff]   ;;  %v396_v13 = vld [vmem:[#allocation2 + $0x50] sm:$0xff]   ;;  %v401_v14 = vld [vmem:[#allocation2 + $0xa8] sm:$0xff]  }
  0x11   :  { %338 = vmatpush3.bf16.msra.mxu0 %v391_v4  ;;  %353 = vmatprep.mubr.msk.bf16.mxu0 %vm437_vm0, %v434_v2  ;;  %v397_v15 = vld [vmem:[#allocation2 + $0x48] sm:$0xff]   ;;  %v402_v16 = vld [vmem:[#allocation2 + $0xa0] sm:$0xff]   ;;  %v403_v18 = vld [vmem:[#allocation2 + $0x98] sm:$0xff]   ;;  %v70_v24 = vsub.s32 0, %v69_v21  ;;  %v79_v25 = vsub.s32 1, %v69_v21  ;;  %v89_v27 = vsub.s32 2, %v69_v21 }
  0x12   :  { %339 = vmatprep.subr.bf16.mxu0 %v434_v2  ;;  %373 = vmatprep.mubr.msk.bf16.mxu1 %vm437_vm0, %v434_v2  ;;  %v398_v17 = vld [vmem:[#allocation2 + $0x40] sm:$0xff]   ;;  %v404_v19 = vld [vmem:[#allocation2 + $0x90] sm:$0xff]   ;;  %v99_v29 = vsub.s32 3, %v69_v21  ;;  %v405_v49 = vld [vmem:[#allocation2 + $0x88] sm:$0xff]  }
  0x13   :  { %358 = vmatpush3.bf16.msra.mxu1 %v399_v11  ;;  %v61_v22 = vld [vmem:[#allocation2] sm:$0x3] }
  0x14   :  { %387 = vset.pattern.permute.xlu0 %v435_v6  ;;  %389 = vset.pattern.permute.xlu1 %v436_v7  ;;  %v62_v23 = vunpack.c.l.bf16 %v61_v22  ;;  %v59_v32 = vld [vmem:[#allocation2 + $0xc0] sm:$0xf] }
  0x15   :  { %74 = vperm.xlu0 %387, %v26_v3   ;;  %94 = vperm.xlu1 %389, %v26_v3   ;;  %v60_v39 = vunpack.c.l.bf16 %v59_v32  ;;  %v406_v50 = vld [vmem:[#allocation2 + $0x80] sm:$0xff]  }
  0x16   :  { %340 = vmatpush3.bf16.msra.mxu0 %v392_v5  ;;  %359 = vmatprep.subr.bf16.mxu1 %v434_v2  ;;  %v71_v30 = vrot.slane %v62_v23, %v70_v24  ;;  %v80_v31 = vrot.slane %v62_v23, %v79_v25  ;;  %v90_v33 = vrot.slane %v62_v23, %v89_v27 }
  0x17   :  { %341 = vmatprep.subr.bf16.mxu0 %v434_v2  ;;  %360 = vmatpush3.bf16.msra.mxu1 %v400_v12  ;;  %v100_v34 = vrot.slane %v62_v23, %v99_v29  ;;  %v106_v43 = vrot.slane %v60_v39, %v70_v24  ;;  %v113_v51 = vrot.slane %v60_v39, %v79_v25 }
  0x18   :  { %361 = vmatprep.subr.bf16.mxu1 %v434_v2  ;;  %v207_v59 = vrot.slane %v60_v39, %v89_v27 }
  0x19   :  { %390 = vset.pattern.permute.xlu0 %v436_v7 }
  0x1a   :  { %342 = vmatpush3.bf16.msra.mxu0 %v393_v8 }
  0x1b   :  { %343 = vmatprep.subr.bf16.mxu0 %v434_v2  ;;  %362 = vmatpush3.bf16.msra.mxu1 %v401_v14 }
  0x1c   :  { %363 = vmatprep.subr.bf16.mxu1 %v434_v2 }
  0x1e   :  { %344 = vmatpush3.bf16.msra.mxu0 %v394_v9 }
  0x1f   :  { %345 = vmatprep.subr.bf16.mxu0 %v434_v2  ;;  %364 = vmatpush3.bf16.msra.mxu1 %v402_v16 }
  0x20   :  { %365 = vmatprep.subr.bf16.mxu1 %v434_v2 }
  0x22   :  { %346 = vmatpush3.bf16.msra.mxu0 %v395_v10 }
  0x23   :  { %347 = vmatprep.subr.bf16.mxu0 %v434_v2  ;;  %366 = vmatpush3.bf16.msra.mxu1 %v403_v18 }
  0x24   :  { %367 = vmatprep.subr.bf16.mxu1 %v434_v2 }
  0x26   :  { %348 = vmatpush3.bf16.msra.mxu0 %v396_v13 }
  0x27   :  { %349 = vmatprep.subr.bf16.mxu0 %v434_v2  ;;  %368 = vmatpush3.bf16.msra.mxu1 %v404_v19 }
  0x28   :  { %369 = vmatprep.subr.bf16.mxu1 %v434_v2 }
  0x2a   :  { %350 = vmatpush3.bf16.msra.mxu0 %v397_v15 }
  0x2b   :  { %351 = vmatprep.subr.bf16.mxu0 %v434_v2  ;;  %370 = vmatpush3.bf16.msra.mxu1 %v405_v49 }
  0x2c   :  { %371 = vmatprep.subr.bf16.mxu1 %v434_v2 }
  0x2e   :  { %352 = vmatpush3.bf16.msra.mxu0 %v398_v17 }
  0x2f   :  { %372 = vmatpush3.bf16.msra.mxu1 %v406_v50 }
  0x8b   :  { %v66_v26 = vpop.permute.xlu0 %65  ;;  %v85_v28 = vpop.permute.xlu1 %84 }
  0x8c   :  { %v72_v37 = vmul.f32 %v71_v30, %v66_v26  ;;  %v91_v40 = vmul.f32 %v90_v33, %v85_v28 }
  0x90   :  { %v75_v35 = vpop.permute.xlu0 %74  ;;  %v95_v36 = vpop.permute.xlu1 %94 }
  0x91   :  { %v81_v38 = vmul.f32 %v80_v31, %v75_v35  ;;  %v101_v42 = vmul.f32 %v100_v34, %v95_v36 }
  0x93   :  { %v82_v41 = vadd.f32 %v81_v38, %v72_v37 }
  0x95   :  { %v92_v44 = vadd.f32 %v91_v40, %v82_v41 }
  0x97   :  { %v102_v45 = vadd.f32 %v101_v42, %v92_v44 }
  0x99   :  { %v107_v46 = vadd.f32 %v106_v43, %v102_v45 }
  0x9b   :  { %v108_v47 = vmax.f32 %v107_v46, 0.0 }
  0x9d   :  { %v109_v48 = vpack.c.bf16 %v108_v47, %v108_v47 }
  0x9f   :  { %354 = vmatmul.mubr.bf16.vlgmr.msra.gmra.mxu0 %v109_v48 }
 0x15f   :  { %v196_v52 = vpop.f32.mrf.mxu0 }
 0x160   :  { %v197_v53 = vadd.f32 %v196_v52, %v113_v51 }
 0x161   :  { %v355_v54 = vpop.f32.mrf.mxu0 }
 0x162   :  { %v202_v55 = vmax.f32 %v197_v53, 0.0 }
 0x163   :  { %v199_v56 = vpop.f32.mrf.mxu0 }
 0x164   :  { %v203_v57 = vpack.c.bf16 %v202_v55, %v202_v55 }
 0x165   :  { %v356_v58 = vpop.f32.mrf.mxu0 }
 0x166   :  { %374 = vmatmul.mubr.bf16.vlgmr.msra.gmra.mxu1 %v203_v57 }
 0x226   :  { %v290_v60 = vpop.f32.mrf.mxu1 }
 0x227   :  { %v291_v61 = vadd.f32 %v290_v60, %v207_v59 }
 0x228   :  { %v375_v62 = vpop.f32.mrf.mxu1 }
 0x229   :  { %v296_v63 = vpack.c.bf16 %v291_v61, %v291_v61 }
 0x22a   :  { %v293_v0 = vpop.f32.mrf.mxu1 }
 0x22b   :  { %297 = vst [vmem:[%s482_s2] sm:$0xf] %v296_v63 }
 0x22c   :  { %v376_v1 = vpop.f32.mrf.mxu1 }
 0x22d   :  { %302 = vsyncpa [#allocation3], 1 }

</bundles_post_ra>
